<compile_context>
chip_gen: v7x
topology: tpu7x:2x2x1
jax: 0.10.0
libtpu: 0.0.40
codegen_flags: <defaults>
</compile_context>

<pallas_src>
import math

import jax
import jax.numpy as jnp
from jax.experimental import pallas as pl
from jax.experimental.pallas import tpu as pltpu


# --------------------------------------------------------------------------
# Kernel
# --------------------------------------------------------------------------
def _make_sum_kernel(n):
    """Kernel: o = x0 + sum_{i>=1} xi * scales[i-1], accumulated in f32."""

    def kernel(scales_ref, *refs):
        # refs = (x0_ref, ..., x_{n-1}_ref, o_ref); scales_ref is SMEM (n-1,)
        x_refs = refs[:n]
        o_ref = refs[n]
        acc = x_refs[0][...].astype(jnp.float32)
        for i in range(1, n):
            acc = acc + x_refs[i][...].astype(jnp.float32) * scales_ref[i - 1]
        o_ref[...] = acc.astype(o_ref.dtype)

    return kernel


# --------------------------------------------------------------------------
# Layout / budgeting helpers
# --------------------------------------------------------------------------
_LANE_CANDIDATES = (4096, 2048, 1024, 512, 256, 128)
_SMALL_BYTES = 2 * 1024 * 1024       # below this, plain XLA fusion wins
_MAX_BLOCK_BYTES = 4 * 1024 * 1024   # per-buffer tile ceiling
_MIN_BLOCK_BYTES = 256 * 1024        # per-buffer tile floor (budget side)
_MIN_DIVISOR_BYTES = 128 * 1024      # smallest acceptable divisor-derived tile


def _sublane_granularity(dtype):
    it = jnp.dtype(dtype).itemsize
    if it >= 4:
        return 8
    if it == 2:
        return 16
    return 32


def _vmem_limit_bytes():
    """Scoped-VMEM budget derived from the actual chip, with safe fallback."""
    phys = 64 * 1024 * 1024  # conservative default (v7x per-TC physical)
    try:
        info = pltpu.get_tpu_info()
        phys = int(getattr(info, "vmem_capacity_bytes", phys))
    except Exception:
        pass
    # ~75% of physical, capped at 96 MiB (v5e/v6e), floored at 16 MiB.
    return max(16 * 1024 * 1024, min((phys * 3) // 4, 96 * 1024 * 1024))


def _choose_layout(total, dtype, n, vmem_limit):
    """Pick (lane_w, blk_r, padded_rows) for a lane-dense 2D streaming view."""
    itemsize = jnp.dtype(dtype).itemsize
    g = _sublane_granularity(dtype)

    # Widest lane dim that divides `total` cleanly and still gives >= g rows.
    lane_w = None
    for cand in _LANE_CANDIDATES:
        if total % cand == 0 and total // cand >= g:
            lane_w = cand
            break
    if lane_w is None:
        for cand in _LANE_CANDIDATES:
            if total % cand == 0:
                lane_w = cand
                break
    if lane_w is None:
        lane_w = 512  # lane tail (total % 128 != 0): pad flat vector to 512x

    rows = pl.cdiv(total, lane_w)

    # Per-buffer block budget: ~55% of the VMEM limit shared across
    # 2*(n+1) double-buffered tiles, clamped to [256 KiB, 4 MiB].
    blk_bytes = int(0.55 * vmem_limit) // (2 * (n + 1))
    blk_bytes = max(_MIN_BLOCK_BYTES, min(blk_bytes, _MAX_BLOCK_BYTES))
    blk_r_cap = max(g, (blk_bytes // (lane_w * itemsize)) // g * g)

    if rows <= blk_r_cap:
        # Whole array fits in one block.  Prefer 2 equal blocks when free
        # (keeps both v7x TensorCores busy); else a single full-extent block.
        if rows % (2 * g) == 0 and rows >= 2 * g:
            return lane_w, rows // 2, rows
        return lane_w, rows, rows

    # Largest blk_r <= cap that is a multiple of g and divides rows exactly
    # -> no row padding, no masked tail, no host-side copies.
    cand = blk_r_cap
    while cand >= g:
        if rows % cand == 0:
            if cand * lane_w * itemsize >= _MIN_DIVISOR_BYTES:
                return lane_w, cand, rows
            break  # only tiny divisors exist; padding is the lesser evil
        cand -= g

    # Rare fallback: pad rows up to a multiple of the cap.
    padded_rows = pl.cdiv(rows, blk_r_cap) * blk_r_cap
    return lane_w, blk_r_cap, padded_rows


# --------------------------------------------------------------------------
# Forward
# --------------------------------------------------------------------------
def sum_forward(xs, w_param=None, *, force_pallas=False):
    """Pallas equivalent of Sum.forward.

    xs           : list of n arrays, all the same shape and dtype.
    w_param      : optional (n-1,) raw parameter; effective weights are
                   2*sigmoid(w_param) (weight=True mode).  None -> plain sum.
    force_pallas : skip the small-input XLA fast path (testing only).
    """
    n = len(xs)
    orig_shape = xs[0].shape
    dtype = xs[0].dtype

    if n == 1:
        return xs[0]

    # Per-input scale factors for x[1:]; x[0] is always added unscaled.
    if w_param is not None:
        scales = 2.0 * jax.nn.sigmoid(w_param.astype(jnp.float32))
    else:
        scales = jnp.ones((n - 1,), jnp.float32)

    total = math.prod(orig_shape)
    itemsize = jnp.dtype(dtype).itemsize
    bytes_moved = (n + 1) * total * itemsize

    # Small-input fast path: launch + pipeline warmup dominates tiny tensors.
    if bytes_moved < _SMALL_BYTES and not force_pallas:
        y = xs[0].astype(jnp.float32)
        for i in range(1, n):
            xi = xs[i].astype(jnp.float32)
            y = y + (xi * scales[i - 1] if w_param is not None else xi)
        return y.astype(dtype)

    vmem_limit = _vmem_limit_bytes()
    lane_w, blk_r, padded_rows, = _choose_layout(total, dtype, n, vmem_limit)
    padded_total = padded_rows * lane_w
    needs_pad = padded_total != total  # rare: lane tail / no usable divisor

    def pack(x):
        flat = jnp.reshape(x, (-1,))          # free (contiguous) reshape
        if needs_pad:
            flat = jnp.pad(flat, (0, padded_total - total))
        return jnp.reshape(flat, (padded_rows, lane_w))

    packed = [pack(x) for x in xs]

    spec = pl.BlockSpec((blk_r, lane_w), lambda i, s: (i, 0))

    cost = pl.CostEstimate(
        flops=2 * (n - 1) * total,
        transcendentals=0,
        bytes_accessed=(n + 1) * total * itemsize,
    )

    out = pl.pallas_call(
        _make_sum_kernel(n),
        out_shape=jax.ShapeDtypeStruct((padded_rows, lane_w), dtype),
        grid_spec=pltpu.PrefetchScalarGridSpec(
            num_scalar_prefetch=1,
            grid=(padded_rows // blk_r,),
            in_specs=[spec] * n,
            out_specs=spec,
        ),
        compiler_params=pltpu.CompilerParams(
            dimension_semantics=("parallel",),
            vmem_limit_bytes=vmem_limit,
        ),
        cost_estimate=cost,
    )(scales, *packed)

    flat_out = jnp.reshape(out, (-1,))
    if needs_pad:
        flat_out = flat_out[:total]
    return jnp.reshape(flat_out, orig_shape)


# --------------------------------------------------------------------------
# Demo / correctness check
# --------------------------------------------------------------------------
if __name__ == "__main__":
    key = jax.random.PRNGKey(0)
    n = 3

    def reference(xs, w_param):
        ref = xs[0]
        if w_param is not None:
            wf = 2.0 * jax.nn.sigmoid(w_param)
            for i in range(n - 1):
                ref = ref + xs[i + 1] * wf[i]
        else:
            for i in range(n - 1):
                ref = ref + xs[i + 1]
        return ref

    # Deterministic parameter init, exactly as in __init__: -arange(1., n) / 2
    w_param = -jnp.arange(1.0, n, dtype=jnp.float32) / 2.0  # shape (n-1,)

    # --- Case 1: small shape (module-typical) -------------------------------
    B, C, H, W = 2, 4, 16, 16
    keys = jax.random.split(key, n)
    xs = [jax.random.normal(k, (B, C, H, W), dtype=jnp.float32) for k in keys]

    # weight=True: fast path (default) and Pallas kernel (forced)
    y_w_fast = jax.block_until_ready(sum_forward(xs, w_param))
    y_w_kern = jax.block_until_ready(sum_forward(xs, w_param, force_pallas=True))
    # weight=False
    y_u_fast = jax.block_until_ready(sum_forward(xs, None))
    y_u_kern = jax.block_until_ready(sum_forward(xs, None, force_pallas=True))

    ref_w = reference(xs, w_param)
    ref_u = reference(xs, None)
    assert y_w_kern.shape == (B, C, H, W) and y_u_kern.shape == (B, C, H, W)
    assert jnp.allclose(y_w_fast, ref_w, atol=1e-5, rtol=1e-5)
    assert jnp.allclose(y_w_kern, ref_w, atol=1e-5, rtol=1e-5)
    assert jnp.allclose(y_u_fast, ref_u, atol=1e-5, rtol=1e-5)
    assert jnp.allclose(y_u_kern, ref_u, atol=1e-5, rtol=1e-5)

    # --- Case 2: medium shape (exercises the multi-block grid path) ---------
    B2, C2, H2, W2 = 2, 8, 64, 128
    keys2 = jax.random.split(jax.random.PRNGKey(1), n)
    xs2 = [jax.random.normal(k, (B2, C2, H2, W2), dtype=jnp.float32) for k in keys2]
    y2 = jax.block_until_ready(sum_forward(xs2, w_param, force_pallas=True))
    ref2 = reference(xs2, w_param)
    assert jnp.allclose(y2, ref2, atol=1e-5, rtol=1e-5)

    print("KERNEL_OK")
</pallas_src>

<mosaic_0001>
module attributes {stable_mosaic.version = 11 : i64} {
  func.func @kernel(%arg0: i32, %arg1: memref<2xf32, #tpu.memory_space<smem>>, %arg2: memref<8x256xf32, #tpu.memory_space<vmem>>, %arg3: memref<8x256xf32, #tpu.memory_space<vmem>>, %arg4: memref<8x256xf32, #tpu.memory_space<vmem>>, %arg5: memref<8x256xf32, #tpu.memory_space<vmem>>) attributes {dimension_semantics = [#tpu.dimension_semantics<parallel>], iteration_bounds = array<i64: 1>, scalar_prefetch = 1 : i64, scratch_operands = 0 : i64, tpu.core_type = #tpu.core_type<tc>, window_params = [{transform_indices = @transform_0, window_bounds = array<i64: 8, 256>}, {transform_indices = @transform_1, window_bounds = array<i64: 8, 256>}, {transform_indices = @transform_2, window_bounds = array<i64: 8, 256>}, {transform_indices = @transform_3, window_bounds = array<i64: 8, 256>}]} {
    %c0 = arith.constant 0 : index
    %c0_0 = arith.constant 0 : index
    %0 = vector.load %arg2[%c0, %c0_0] : memref<8x256xf32, #tpu.memory_space<vmem>>, vector<8x256xf32>
    %c0_1 = arith.constant 0 : index
    %c0_2 = arith.constant 0 : index
    %1 = vector.load %arg3[%c0_1, %c0_2] : memref<8x256xf32, #tpu.memory_space<vmem>>, vector<8x256xf32>
    %c0_3 = arith.constant 0 : index
    %2 = memref.load %arg1[%c0_3] : memref<2xf32, #tpu.memory_space<smem>>
    %3 = vector.broadcast %2 : f32 to vector<8x256xf32>
    %4 = arith.mulf %1, %3 : vector<8x256xf32>
    %5 = arith.addf %0, %4 : vector<8x256xf32>
    %c0_4 = arith.constant 0 : index
    %c0_5 = arith.constant 0 : index
    %6 = vector.load %arg4[%c0_4, %c0_5] : memref<8x256xf32, #tpu.memory_space<vmem>>, vector<8x256xf32>
    %c1 = arith.constant 1 : index
    %7 = memref.load %arg1[%c1] : memref<2xf32, #tpu.memory_space<smem>>
    %8 = vector.broadcast %7 : f32 to vector<8x256xf32>
    %9 = arith.mulf %6, %8 : vector<8x256xf32>
    %10 = arith.addf %5, %9 : vector<8x256xf32>
    %c0_6 = arith.constant 0 : index
    %c0_7 = arith.constant 0 : index
    %11 = vector.load %arg5[%c0_6, %c0_7] : memref<8x256xf32, #tpu.memory_space<vmem>>, vector<8x256xf32>
    tpu.vector_store %arg5[%c0_6, %c0_7], %10 {strides = array<i32>} : memref<8x256xf32, #tpu.memory_space<vmem>>, vector<8x256xf32>,
    return
  }
  func.func @transform_0(%arg0: i32, %arg1: memref<2xf32, #tpu.memory_space<smem>>) -> (i32, i32) {
    %c0_i32 = arith.constant 0 : i32
    %c0_i32_0 = arith.constant 0 : i32
    return %arg0, %c0_i32 : i32, i32
  }
  func.func @transform_1(%arg0: i32, %arg1: memref<2xf32, #tpu.memory_space<smem>>) -> (i32, i32) {
    %c0_i32 = arith.constant 0 : i32
    %c0_i32_0 = arith.constant 0 : i32
    return %arg0, %c0_i32 : i32, i32
  }
  func.func @transform_2(%arg0: i32, %arg1: memref<2xf32, #tpu.memory_space<smem>>) -> (i32, i32) {
    %c0_i32 = arith.constant 0 : i32
    %c0_i32_0 = arith.constant 0 : i32
    return %arg0, %c0_i32 : i32, i32
  }
  func.func @transform_3(%arg0: i32, %arg1: memref<2xf32, #tpu.memory_space<smem>>) -> (i32, i32) {
    %c0_i32 = arith.constant 0 : i32
    %c0_i32_0 = arith.constant 0 : i32
    return %arg0, %c0_i32 : i32, i32
  }
}

</mosaic_0001>

<bundles_post_ra>
// kernel: tpu_custom_call.1
= control target key start
LH: loop header
LB: loop body
LE: loop exit
PB: predicated region body
PF: predicated region fallthrough
CT: control target
= control target key end

     0   :  { %s293_s0 = inlined_call_operand.hbm [shape: f32[2], index: 0, kind: input, shape index: {}]   ;;  %s294_s1 = inlined_call_operand.hbm [shape: f32[8,256], index: 1, kind: input, shape index: {}]   ;;  %s295_s2 = inlined_call_operand.hbm [shape: f32[8,256], index: 2, kind: input, shape index: {}]   ;;  %s296_s3 = inlined_call_operand.hbm [shape: f32[8,256], index: 3, kind: input, shape index: {}]   ;;  %s297_s4 = inlined_call_operand.hbm [shape: f32[8,256], index: 4, kind: output, shape index: {}]  }
   0x1   :  { %s97_s17 = scalar_lea.hbm %s293_s0, 16 }
   0x2   :  { %p98_p0 = scmp.ne.s32.totalorder %s293_s0, %s97_s17  ;;  %p101_p1 = scmp.lt.u32.totalorder %s97_s17, %s293_s0 }
   0x4   :  { %p103_p2 = pnand %p101_p1, %p98_p0 }
   0x6   :  { %106 = shalt.err (!%p103_p2)  }
   0x7   :  { %s203_s22 = smov [#allocation3]  }
   0x8   :  { %10 = dma.hbm_to_smem %s293_s0, 16, %s203_s22, [#allocation2] }
   0x9   :  { %195 = dma.done.wait [#allocation2], 16 }
   0xa   :  { %196 = vsyncadd [#allocation2], 4294967280 }
   0xb   :  { %12 = sfence }
   0xc   :  { %13 = vsyncpa [#allocation5], 0 }
   0xd   :  { %14 = vsyncpa [#allocation8], 0 }
   0xe   :  { %15 = vsyncpa [#allocation6], 0  ;;  %s204_s25 = smov [#allocation7]   ;;  %s205_s27 = smov [#allocation4]  }
   0xf   :  { %s32_s26 = sshll.u32 %s204_s25, 4  ;;  %s22_s28 = sshll.u32 %s205_s27, 4  ;;  %s33_s26 = int_to_ptr.vmem [resolvable:$true] %s32_s26  ;;  %s23_s28 = int_to_ptr.vmem [resolvable:$true] %s22_s28 }
  0x10   :  { %s107_s5 = scalar_lea.hbm %s295_s2, 256 }
  0x11   :  { %p108_p3 = scmp.ne.s32.totalorder %s295_s2, %s107_s5  ;;  %p111_p4 = scmp.lt.u32.totalorder %s107_s5, %s295_s2 }
  0x13   :  { %p113_p5 = pnand %p111_p4, %p108_p3 }
  0x15   :  { %116 = shalt.err (!%p113_p5)
}
  0x16   :  { %s117_s9 = scalar_lea.vmem %s33_s26, 256  ;;  %p122_p7 = scmp.lt.s32.totalorder %s33_s26, %s33_s26 }
  0x17   :  { %p118_p6 = scmp.ne.s32.totalorder %s33_s26, %s117_s9  ;;  %p123_p8 = scmp.lt.s32.totalorder %s117_s9, %s117_s9 }
  0x19   :  { %p124_p9 = por %p123_p8, %p122_p7 }
  0x1b   :  { %p125_p10 = pnand %p124_p9, %p118_p6 }
  0x1d   :  { %128 = shalt.err (!%p125_p10)
}
  0x1e   :  { %35 = dma.hbm_to_vmem [thread:$0]  %s295_s2, 256, %s33_s26, [#allocation8]  }
  0x1f   :  { %s129_s14 = scalar_lea.hbm %s294_s1, 256 }
  0x20   :  { %p130_p11 = scmp.ne.s32.totalorder %s294_s1, %s129_s14  ;;  %p133_p12 = scmp.lt.u32.totalorder %s129_s14, %s294_s1 }
  0x22   :  { %p135_p13 = pnand %p133_p12, %p130_p11 }
  0x24   :  { %138 = shalt.err (!%p135_p13)
}
  0x25   :  { %s139_s19 = scalar_lea.vmem %s23_s28, 256  ;;  %p144_p1 = scmp.lt.s32.totalorder %s23_s28, %s23_s28 }
  0x26   :  { %p140_p0 = scmp.ne.s32.totalorder %s23_s28, %s139_s19  ;;  %p145_p2 = scmp.lt.s32.totalorder %s139_s19, %s139_s19 }
  0x28   :  { %p146_p3 = por %p145_p2, %p144_p1 }
  0x2a   :  { %p147_p4 = pnand %p146_p3, %p140_p0 }
  0x2c   :  { %150 = shalt.err (!%p147_p4)
}
  0x2d   :  { %25 = dma.hbm_to_vmem [thread:$0]  %s294_s1, 256, %s23_s28, [#allocation5]  }
  0x2e   :  { %s206_s21 = smov [#allocation9]   ;;  %s151_s25 = scalar_lea.hbm %s296_s3, 256 }
  0x2f   :  { %s42_s22 = sshll.u32 %s206_s21, 4  ;;  %p152_p5 = scmp.ne.s32.totalorder %s296_s3, %s151_s25  ;;  %s43_s22 = int_to_ptr.vmem [resolvable:$true] %s42_s22 }
  0x30   :  { %p155_p6 = scmp.lt.u32.totalorder %s151_s25, %s296_s3 }
  0x32   :  { %p157_p7 = pnand %p155_p6, %p152_p5 }
  0x34   :  { %160 = shalt.err (!%p157_p7)
}
  0x35   :  { %s161_s5 = scalar_lea.vmem %s43_s22, 256  ;;  %p166_p9 = scmp.lt.s32.totalorder %s43_s22, %s43_s22 }
  0x36   :  { %p162_p8 = scmp.ne.s32.totalorder %s43_s22, %s161_s5  ;;  %p167_p10 = scmp.lt.s32.totalorder %s161_s5, %s161_s5 }
  0x38   :  { %p168_p11 = por %p167_p10, %p166_p9 }
  0x3a   :  { %p169_p12 = pnand %p168_p11, %p162_p8 }
  0x3c   :  { %172 = shalt.err (!%p169_p12)
}
  0x3d   :  { %45 = dma.hbm_to_vmem [thread:$0]  %s296_s3, 256, %s43_s22, [#allocation8]  }
  0x3e   :  { %197 = dma.done.wait [#allocation5], 256  }
  0x3f   :  { %198 = vsyncadd [#allocation5], 4294967040 }
  0x40   :  { %199 = dma.done.wait [#allocation8], 512  }
  0x41   :  { %200 = vsyncadd [#allocation8], 4294966784  ;;  %s59_s6 = sld [smem:[#allocation3]]  ;;  %s91_s7 = sld [smem:[#allocation3 + $0x1]]  ;;  %v55_v0 = vld [vmem:[#allocation4] sm:$0xff]  ;;  %v57_v1 = vld [vmem:[#allocation7] sm:$0xff] }
  0x42   :  { %v65_v3 = vld [vmem:[#allocation9] sm:$0xff]  ;;  %v56_v7 = vld [vmem:[#allocation4 + $0x8] sm:$0xff]  ;;  %v58_v8 = vld [vmem:[#allocation7 + $0x8] sm:$0xff]  ;;  %s207_s3 = smov [#allocation10]  }
  0x43   :  { %v66_v9 = vld [vmem:[#allocation9 + $0x8] sm:$0xff]  ;;  %s81_s0 = sshll.u32 %s207_s3, 4  ;;  %s82_s0 = int_to_ptr.vmem [resolvable:$true] %s81_s0 }
  0x44   :  { %s173_s8 = scalar_lea.vmem %s82_s0, 256  ;;  %p178_p0 = scmp.lt.s32.totalorder %s82_s0, %s82_s0 }
  0x45   :  { %p174_p13 = scmp.ne.s32.totalorder %s82_s0, %s173_s8  ;;  %p179_p1 = scmp.lt.s32.totalorder %s173_s8, %s173_s8 }
  0x47   :  { %v60_v2 = vstv %s59_s6  ;;  %v68_v4 = vstv %s91_s7  ;;  %p180_p2 = por %p179_p1, %p178_p0 }
  0x48   :  { %v61_v5 = vmul.f32 %v60_v2, %v57_v1  ;;  %v69_v6 = vmul.f32 %v68_v4, %v65_v3  ;;  %v62_v10 = vmul.f32 %v60_v2, %v58_v8  ;;  %v70_v11 = vmul.f32 %v68_v4, %v66_v9 }
  0x49   :  { %p181_p3 = pnand %p180_p2, %p174_p13 }
  0x4a   :  { %v63_v12 = vadd.f32 %v61_v5, %v55_v0  ;;  %v64_v13 = vadd.f32 %v62_v10, %v56_v7 }
  0x4c   :  { %v71_v14 = vadd.f32 %v69_v6, %v63_v12  ;;  %v72_v15 = vadd.f32 %v70_v11, %v64_v13 }
  0x4e   :  { %73 = vst [vmem:[#allocation10] sm:$0xff] %v71_v14  ;;  %74 = vst [vmem:[#allocation10 + $0x8] sm:$0xff] %v72_v15 }
  0x4f   :  { %184 = shalt.err (!%p181_p3)
}
  0x50   :  { %s185_s11 = scalar_lea.hbm %s297_s4, 256 }
  0x51   :  { %p186_p4 = scmp.ne.s32.totalorder %s297_s4, %s185_s11  ;;  %p189_p5 = scmp.lt.u32.totalorder %s185_s11, %s297_s4 }
  0x53   :  { %p191_p6 = pnand %p189_p5, %p186_p4 }
  0x55   :  { %194 = shalt.err (!%p191_p6)
}
  0x56   :  { %84 = dma.vmem_to_hbm [thread:$0]  %s82_s0, 256, %s297_s4, [#allocation6]  }
  0x57   :  { %201 = dma.done.wait [#allocation6], 256  }
  0x58   :  { %202 = vsyncadd [#allocation6], 4294967040 }
  0x59   :  { %88 = vsyncpa [#allocation5], 1 }
  0x5a   :  { %89 = vsyncpa [#allocation8], 1 }
  0x5b   :  { %90 = vsyncpa [#allocation6], 1 }

</bundles_post_ra>
